<compile_context>
chip_gen: v7x
topology: tpu7x:2x2x1
jax: 0.10.0
libtpu: 0.0.40
codegen_flags: <defaults>
</compile_context>

<pallas_src>
import math
import numpy as np
import jax
import jax.numpy as jnp
from jax.experimental import pallas as pl
from jax.experimental.pallas import tpu as pltpu


def _build_pe_table(d_model: int, max_length: int) -> np.ndarray:
    """Deterministic sin/cos PE table, identical to the PyTorch __init__ loop."""
    pe = np.zeros((max_length, d_model), dtype=np.float32)
    token_ids = np.arange(max_length, dtype=np.float64)[:, None]      # (L, 1)
    idx = np.arange(0, d_model, 2, dtype=np.float64)[None, :]         # (1, D/2)
    w_k = 1.0 / (10000.0 ** (idx / d_model))                          # (1, D/2)
    ang = w_k * token_ids                                             # (L, D/2)
    pe[:, 0::2] = np.sin(ang).astype(np.float32)
    pe[:, 1::2] = np.cos(ang).astype(np.float32)
    return pe


def _pe_add_kernel(x_ref, pe_ref, o_ref):
    # x_ref: (TR, W), pe_ref: (1, W) -> sublane-broadcast add on the VPU.
    # (Per-iteration broadcast is negligible here: the kernel is HBM-bound.)
    o_ref[...] = (x_ref[...] + pe_ref[...]).astype(o_ref.dtype)


def _divisors(n: int):
    ds = []
    i = 1
    while i * i <= n:
        if n % i == 0:
            ds.append(i)
            if i * i != n:
                ds.append(n // i)
        i += 1
    return ds


def _choose_row_group(bs: int, D: int, max_w: int = 8192):
    """Pick r | bs so the flattened width W = D*r is lane-dense (W % 128 == 0).

    Returns (r, lane_pad).  If no divisor of bs yields a lane-dense width
    within the cap, the widest candidate is padded up to the next multiple of
    128 so output stores stay unmasked and DMAs stay efficient.
    """
    best_any, best_dense = 1, None
    r = 1
    while r <= bs and D * r <= max_w:
        if bs % r == 0:
            best_any = r
            if (D * r) % 128 == 0:
                best_dense = r
        r += 1
    if best_dense is not None:
        return best_dense, 0
    W = D * best_any
    return best_any, (-W) % 128


def _choose_row_tile(rows: int, bytes_per_row: int,
                     target_tile_bytes: int = 4 << 20) -> int:
    """Largest divisor-of-rows tile (multiple of 8) near the ~4 MiB plateau.

    Prefers >= 2 grid blocks so dimension_semantics=("parallel",) can shard
    the streaming axis across v7x's two TensorCores; avoids ragged tails.
    """
    cap = max(1, target_tile_bytes // max(bytes_per_row, 1))
    if rows <= cap:
        if rows >= 16 and rows % 16 == 0:
            return rows // 2          # two sublane-aligned blocks, no tail
        return rows                   # single full-extent block (tiny input)
    best = 0
    for d in _divisors(rows):
        if d <= cap and d % 8 == 0 and d > best:
            best = d
    if best:
        return best
    # No clean divisor: accept one ragged (masked) tail block.
    return max(8, (cap // 8) * 8)


def position_encoding_forward(x: jax.Array, pe_table: jax.Array) -> jax.Array:
    """x: (B, S, D), pe_table: (max_length, D). Returns x + pe_table[S]."""
    B, S, D = x.shape
    max_length = pe_table.shape[0]
    # jnp static fancy indexing clamps silently; fail loudly instead.
    assert S < max_length, f"seq_len {S} must be < max_length {max_length}"

    out_dtype = jnp.promote_types(x.dtype, pe_table.dtype)

    # Lane-dense 2D layout: (rows, W) with W = D * r so the PE pattern
    # (period D along the flattened axis) aligns with every row.
    r, lane_pad = _choose_row_group(B * S, D)
    W = D * r
    W_total = W + lane_pad
    rows = (B * S) // r

    x2d = x.reshape(rows, W)
    if lane_pad:
        x2d = jnp.pad(x2d, ((0, 0), (0, lane_pad)))

    # Single PE row at index S, pre-tiled once into a (1, W_total) slab.
    pe_row = pe_table[S].astype(out_dtype)               # (D,)
    pe_slab = jnp.tile(pe_row, r).reshape(1, W)          # (1, W)
    if lane_pad:
        pe_slab = jnp.pad(pe_slab, ((0, 0), (0, lane_pad)))

    x_item = jnp.dtype(x.dtype).itemsize
    o_item = jnp.dtype(out_dtype).itemsize

    TR = _choose_row_tile(rows, W_total * max(x_item, o_item))
    grid = (pl.cdiv(rows, TR),)

    # Real double-buffered footprint (+ slack), capped at v7x's 32 MiB scoped
    # default; explicit because it exceeds v5e's 16 MiB default at full tiles.
    tile_bytes = TR * W_total * (x_item + o_item)        # x tile + out tile
    pe_bytes = 8 * W_total * o_item                      # padded to sublane tile
    vmem_limit = int(min(32 << 20,
                         max(2 * tile_bytes + 2 * pe_bytes + (4 << 20),
                             8 << 20)))

    n_elems = B * S * D
    cost = pl.CostEstimate(
        flops=n_elems,
        transcendentals=0,
        bytes_accessed=n_elems * x_item + n_elems * o_item + W_total * o_item,
    )

    out2d = pl.pallas_call(
        _pe_add_kernel,
        out_shape=jax.ShapeDtypeStruct((rows, W_total), out_dtype),
        grid_spec=pltpu.PrefetchScalarGridSpec(
            num_scalar_prefetch=0,
            grid=grid,
            in_specs=[
                pl.BlockSpec((TR, W_total), lambda i: (i, 0)),
                pl.BlockSpec((1, W_total), lambda i: (0, 0)),
            ],
            out_specs=pl.BlockSpec((TR, W_total), lambda i: (i, 0)),
        ),
        compiler_params=pltpu.CompilerParams(
            dimension_semantics=("parallel",),
            vmem_limit_bytes=vmem_limit,
        ),
        cost_estimate=cost,
        # No input_output_aliases: the PyTorch forward is out-of-place, and
        # aliasing a non-donated x would force a defensive HBM copy.
    )(x2d, pe_slab)

    if lane_pad:
        out2d = out2d[:, :W]
    return out2d.reshape(B, S, D)


# Jitted entry point: keeps the reshape a bitcast and fuses pe_slab / pad /
# slice around the pallas_call into a single dispatch.
position_encoding_forward_jit = jax.jit(position_encoding_forward)


if __name__ == "__main__":
    d_model = 32
    max_length = 500
    B, S = 2, 8

    pe_np = _build_pe_table(d_model, max_length)
    pe_table = jnp.asarray(pe_np)

    key = jax.random.PRNGKey(0)
    x = jax.random.normal(key, (B, S, d_model), dtype=jnp.float32)

    out = position_encoding_forward_jit(x, pe_table)
    out = jax.block_until_ready(out)

    # Reference check (plain JAX, same semantics as the PyTorch forward).
    ref = x + pe_table[S][None, None, :]
    assert out.shape == (B, S, d_model)
    assert out.dtype == ref.dtype
    np.testing.assert_allclose(np.asarray(out), np.asarray(ref), rtol=1e-6, atol=1e-6)

    print("KERNEL_OK")
</pallas_src>

<mosaic_0001>
module attributes {stable_mosaic.version = 11 : i64} {
  func.func @_pe_add_kernel(%arg0: i32, %arg1: memref<1x512xf32, #tpu.memory_space<vmem>>, %arg2: memref<1x512xf32, #tpu.memory_space<vmem>>, %arg3: memref<1x512xf32, #tpu.memory_space<vmem>>) attributes {dimension_semantics = [#tpu.dimension_semantics<parallel>], iteration_bounds = array<i64: 1>, scalar_prefetch = 0 : i64, scratch_operands = 0 : i64, tpu.core_type = #tpu.core_type<tc>, window_params = [{transform_indices = @transform_0, window_bounds = array<i64: 1, 512>}, {pipeline_mode = #tpu.pipeline_mode<synchronous>, transform_indices = @transform_1, window_bounds = array<i64: 1, 512>}, {transform_indices = @transform_2, window_bounds = array<i64: 1, 512>}]} {
    %c0 = arith.constant 0 : index
    %c0_0 = arith.constant 0 : index
    %0 = vector.load %arg1[%c0, %c0_0] : memref<1x512xf32, #tpu.memory_space<vmem>>, vector<1x512xf32>
    %c0_1 = arith.constant 0 : index
    %c0_2 = arith.constant 0 : index
    %1 = vector.load %arg2[%c0_1, %c0_2] : memref<1x512xf32, #tpu.memory_space<vmem>>, vector<1x512xf32>
    %2 = arith.addf %0, %1 : vector<1x512xf32>
    %c0_3 = arith.constant 0 : index
    %c0_4 = arith.constant 0 : index
    %3 = vector.load %arg3[%c0_3, %c0_4] : memref<1x512xf32, #tpu.memory_space<vmem>>, vector<1x512xf32>
    tpu.vector_store %arg3[%c0_3, %c0_4], %2 {strides = array<i32>} : memref<1x512xf32, #tpu.memory_space<vmem>>, vector<1x512xf32>,
    return
  }
  func.func @transform_0(%arg0: i32) -> (i32, i32) {
    %c0_i32 = arith.constant 0 : i32
    %c0_i32_0 = arith.constant 0 : i32
    return %arg0, %c0_i32 : i32, i32
  }
  func.func @transform_1(%arg0: i32) -> (i32, i32) {
    %c0_i32 = arith.constant 0 : i32
    %c0_i32_0 = arith.constant 0 : i32
    %c0_i32_1 = arith.constant 0 : i32
    return %c0_i32, %c0_i32_0 : i32, i32
  }
  func.func @transform_2(%arg0: i32) -> (i32, i32) {
    %c0_i32 = arith.constant 0 : i32
    %c0_i32_0 = arith.constant 0 : i32
    return %arg0, %c0_i32 : i32, i32
  }
}

</mosaic_0001>

<bundles_post_ra>
// kernel: tile.6
= control target key start
LH: loop header
LB: loop body
LE: loop exit
PB: predicated region body
PF: predicated region fallthrough
CT: control target
= control target key end

     0   :  { %s28_s0 = inlined_call_operand.vmem [shape: f32[32], index: 0, kind: input, shape index: {}]   ;;  %s29_s1 = inlined_call_operand.vmem [shape: f32[16,32], index: 1, kind: output, shape index: {}]  }
   0x1   :  { %v4_v0 = vld [vmem:[%s28_s0] ss:$0 sm:$0xff] }
   0x2   :  { %5 = vst [vmem:[%s29_s1] sm:$0xff] %v4_v0  ;;  %8 = vst [vmem:[%s29_s1 + $0x8] sm:$0xff] %v4_v0 }

// kernel: tile.7
= control target key start
LH: loop header
LB: loop body
LE: loop exit
PB: predicated region body
PF: predicated region fallthrough
CT: control target
= control target key end

     0   :  { %s57_s8 = smov 96   ;;  %vm3_vm0 = vcmask 261120   ;;  %s59_s15 = smov 64   ;;  %vm9_vm1 = vcmask 1048320   ;;  %vm15_vm2 = vcmask 785920   ;;  %vm21_vm3 = vcmask 523520   ;;  %s94_s0 = inlined_call_operand.vmem [shape: f32[16,32], index: 0, kind: input, shape index: {}]   ;;  %s95_s1 = inlined_call_operand.vmem [shape: f32[1,512], index: 1, kind: output, shape index: {}]  }
   0x1   :  { %v48_v0 = vld [vmem:[%s94_s0 + $0x3] ss:$4 sm:$0xf]   ;;  %v49_v1 = vld [vmem:[%s94_s0 + $0x2] ss:$4 sm:$0xf]  }
   0x2   :  { %7 = vrot.lane.b32.xlu0 %v48_v0, %s57_s8  ;;  %v50_v2 = vld [vmem:[%s94_s0 + $0x1] ss:$4 sm:$0xf]   ;;  %v2_v3 = vld [vmem:[%s94_s0] ss:$4 sm:$0xf]  }
   0x3   :  { %s58_s0 = smov 32   ;;  %4 = vst.msk [vmem:[#allocation0] ss:$8 sm:$0xf] %vm3_vm0, %v2_v3  }
   0x4   :  { %19 = vrot.lane.b32.xlu1 %v50_v2, %s58_s0 }
   0x6   :  { %13 = vrot.lane.b32.xlu0 %v49_v1, %s59_s15 }
  0x74   :  { %v8_v4 = vpop.permute.xlu0 %7  }
  0x75   :  { %10 = vst.msk [vmem:[#allocation0] ss:$8 sm:$0xf] %vm9_vm1, %v8_v4  }
  0x76   :  { %v20_v5 = vpop.permute.xlu1 %19  }
  0x78   :  { %v14_v6 = vpop.permute.xlu0 %13  }
  0x79   :  { %16 = vst.msk [vmem:[#allocation0] ss:$8 sm:$0xf] %vm15_vm2, %v14_v6  }
  0x7a   :  { %22 = vst.msk [vmem:[#allocation0] ss:$8 sm:$0xf] %vm21_vm3, %v20_v5  }
  0x81   :  { %v26_v7 = vld [vmem:[#allocation0] sm:$0x1]  ;;  %v30_v8 = vld [vmem:[#allocation0 + $0x8] sm:$0x1]  ;;  %v35_v9 = vld [vmem:[#allocation0 + $0x10] sm:$0x1] }
  0x82   :  { %28 = vst [vmem:[%s95_s1] sm:$0x1] %v26_v7  ;;  %51 = vst [vmem:[%s95_s1 + $0x1] sm:$0x1] %v30_v8  ;;  %v41_v10 = vld [vmem:[#allocation0 + $0x18] sm:$0x1] }
  0x83   :  { %52 = vst [vmem:[%s95_s1 + $0x2] sm:$0x1] %v35_v9  ;;  %53 = vst [vmem:[%s95_s1 + $0x3] sm:$0x1] %v41_v10 }

// kernel: position_encoding_forward.1
= control target key start
LH: loop header
LB: loop body
LE: loop exit
PB: predicated region body
PF: predicated region fallthrough
CT: control target
= control target key end

     0   :  { %v14_v0 = vlaneseq  ;;  %s47_s0 = inlined_call_operand.vmem [shape: f32[1,512], index: 0, kind: input, shape index: {}]   ;;  %s48_s1 = inlined_call_operand.vmem [shape: f32[1,512], index: 1, kind: input, shape index: {}]   ;;  %s49_s2 = inlined_call_operand.vmem [shape: f32[1,512], index: 2, kind: output, shape index: {}]  }
   0x1   :  { %v11_v1 = vld [vmem:[%s47_s0] sm:$0xf] }
   0x2   :  { %v12_v2 = vld [vmem:[%s48_s1] sm:$0xf]  ;;  %vm16_vm0 = vcmp.lt.s32.totalorder %v14_v0, 512 }
   0x3   :  { %v13_v3 = vadd.f32 %v12_v2, %v11_v1 }
   0x5   :  { %18 = vst.msk [vmem:[%s49_s2] sm:$0xf] %vm16_vm0, %v13_v3 }

</bundles_post_ra>
